<compile_context>
chip_gen: v5e
topology: v5e:2x2
jax: 0.10.0
libtpu: 0.0.40
codegen_flags: <defaults>
</compile_context>

<pallas_src>
import math
import functools

import jax
import jax.numpy as jnp
from jax import lax
from jax.experimental import pallas as pl
from jax.experimental.pallas import tpu as pltpu


def gru_ode_kernel(h_ref, wr_ref, wi_ref, wn_ref, br_ref, bi_ref, bn_ref,
                   out_ref, *, num_steps):
    TB, H = h_ref.shape

    # f32 accumulator for the hidden state (downcast only at the final store).
    h0 = h_ref[...].astype(jnp.float32)

    # Per-gate recurrent weights in their storage dtype (bf16 by default),
    # fed straight to the MXU with f32 accumulation.
    wr = wr_ref[...]
    wi = wi_ref[...]
    wn = wn_ref[...]
    mat_dtype = wr.dtype

    # Hoist bias broadcasts out of the loop (no CSE for broadcast_in_dim).
    br = jnp.broadcast_to(br_ref[...].astype(jnp.float32), (TB, H))
    bi = jnp.broadcast_to(bi_ref[...].astype(jnp.float32), (TB, H))
    bn = jnp.broadcast_to(bn_ref[...].astype(jnp.float32), (TB, H))

    dt = 1.0 / float(num_steps)
    one_plus_dt = jnp.float32(1.0 + dt)
    dt_f32 = jnp.float32(dt)

    def ode_step(_, h_cur):
        hm = h_cur.astype(mat_dtype)
        # Lane-dense per-gate matmuls (MXU, f32 accumulation).
        g_r = jnp.dot(hm, wr, preferred_element_type=jnp.float32) + br
        g_i = jnp.dot(hm, wi, preferred_element_type=jnp.float32) + bi
        g_n = jnp.dot(hm, wn, preferred_element_type=jnp.float32) + bn
        resetgate = jax.nn.sigmoid(g_r)          # EUP
        inputgate = jax.nn.sigmoid(g_i)          # EUP
        newgate = jnp.tanh(resetgate * g_n)      # EUP
        # Fused explicit-Euler update (see header): 5 VPU ops instead of 7.
        return h_cur * one_plus_dt + (dt_f32 * inputgate) * (newgate - h_cur)

    # TODO(synk): reference uses adaptive odeint (torchdiffeq dopri5); a
    # fixed-step explicit Euler integrator is used here instead.
    h_final = lax.fori_loop(0, num_steps, ode_step, h0, unroll=True)
    out_ref[...] = h_final.astype(out_ref.dtype)


def _pick_batch_tile(batch, target=256):
    """Largest sublane-aligned batch tile <= target that evenly covers batch."""
    if batch <= target:
        return batch                      # full-extent block (always legal)
    for tb in (target, 128, 64, 32, 16, 8):
        if tb % 8 == 0 and batch % tb == 0:
            return tb
    return batch


def gru_ode_cell_forward(h, x, wx, bx, wh, bh, *, input_size, hidden_size,
                         num_steps=8, matmul_dtype=jnp.bfloat16,
                         batch_tile=256):
    """Equivalent of GRUODECell.forward(h, x).

    x / wx / bx are accepted for interface parity with the reference module but
    are unused: in the reference, gate_x only feeds an unused tensor, so the
    ODE dynamics never depend on the input (deleting it is a numerical no-op).
    """
    del x, wx, bx  # dead gate_x path in the reference module
    B = h.shape[0]
    H = hidden_size

    # Per-gate, pre-transposed recurrent weights: gate_h_g = h @ Wg^T + bg.
    w_r = jnp.asarray(wh[0 * H:1 * H].T, dtype=matmul_dtype)   # (H, H)
    w_i = jnp.asarray(wh[1 * H:2 * H].T, dtype=matmul_dtype)   # (H, H)
    w_n = jnp.asarray(wh[2 * H:3 * H].T, dtype=matmul_dtype)   # (H, H)
    b_r = bh[0 * H:1 * H].reshape(1, H)
    b_i = bh[1 * H:2 * H].reshape(1, H)
    b_n = bh[2 * H:3 * H].reshape(1, H)

    TB = _pick_batch_tile(B, batch_tile)
    grid = (pl.cdiv(B, TB),)

    h_spec = pl.BlockSpec((TB, H), lambda i: (i, 0))
    w_spec = pl.BlockSpec((H, H), lambda i: (0, 0))   # weights resident across grid
    b_spec = pl.BlockSpec((1, H), lambda i: (0, 0))
    out_spec = pl.BlockSpec((TB, H), lambda i: (i, 0))

    itemsize = jnp.dtype(matmul_dtype).itemsize
    cost = pl.CostEstimate(
        flops=6 * B * H * H * num_steps,                 # 3 matmuls/step
        transcendentals=3 * B * H * num_steps,           # 2 sigmoid + 1 tanh /step
        bytes_accessed=(2 * B * H * h.dtype.itemsize     # h in + h out
                        + 3 * H * H * itemsize           # weights
                        + 3 * H * 4),                    # biases
    )

    h_t1 = pl.pallas_call(
        functools.partial(gru_ode_kernel, num_steps=num_steps),
        out_shape=jax.ShapeDtypeStruct((B, H), h.dtype),
        grid=grid,
        in_specs=[h_spec, w_spec, w_spec, w_spec, b_spec, b_spec, b_spec],
        out_specs=out_spec,
        compiler_params=pltpu.CompilerParams(
            dimension_semantics=("parallel",)),   # shard batch across v7x TCs
        cost_estimate=cost,
    )(h, w_r, w_i, w_n, b_r, b_i, b_n)

    # reference: out[1][:, self.input_size:]  (cheap XLA slice; keeps the kernel
    # store lane-dense instead of a masked partial-width store)
    return h_t1[:, input_size:]


if __name__ == "__main__":
    B = 4
    input_size = 16
    hidden_size = 32

    key = jax.random.PRNGKey(0)
    k_h, k_x, k1, k2, k3, k4 = jax.random.split(key, 6)

    # deterministic parameter init: uniform(-std, std), std = 1/sqrt(hidden_size)
    std = 1.0 / math.sqrt(hidden_size)
    wx = jax.random.uniform(k1, (3 * hidden_size, input_size), jnp.float32, -std, std)
    bx = jax.random.uniform(k2, (3 * hidden_size,), jnp.float32, -std, std)
    wh = jax.random.uniform(k3, (3 * hidden_size, hidden_size), jnp.float32, -std, std)
    bh = jax.random.uniform(k4, (3 * hidden_size,), jnp.float32, -std, std)

    h = jax.random.normal(k_h, (B, hidden_size), jnp.float32)
    x = jax.random.normal(k_x, (B, input_size), jnp.float32)

    out = gru_ode_cell_forward(h, x, wx, bx, wh, bh,
                               input_size=input_size, hidden_size=hidden_size)
    out = jax.block_until_ready(out)
    assert out.shape == (B, hidden_size - input_size), out.shape
    assert out.dtype == jnp.float32
    assert bool(jnp.all(jnp.isfinite(out)))
    print("KERNEL_OK")
</pallas_src>

<mosaic_0001>
module attributes {stable_mosaic.version = 11 : i64} {
  func.func @gru_ode_kernel(%arg0: i32, %arg1: memref<4x32xf32, #tpu.memory_space<vmem>>, %arg2: memref<32x32xbf16, #tpu.memory_space<vmem>>, %arg3: memref<32x32xbf16, #tpu.memory_space<vmem>>, %arg4: memref<32x32xbf16, #tpu.memory_space<vmem>>, %arg5: memref<1x32xf32, #tpu.memory_space<vmem>>, %arg6: memref<1x32xf32, #tpu.memory_space<vmem>>, %arg7: memref<1x32xf32, #tpu.memory_space<vmem>>, %arg8: memref<4x32xf32, #tpu.memory_space<vmem>>) attributes {dimension_semantics = [#tpu.dimension_semantics<parallel>], iteration_bounds = array<i64: 1>, scalar_prefetch = 0 : i64, scratch_operands = 0 : i64, tpu.core_type = #tpu.core_type<tc>, window_params = [{transform_indices = @transform_0, window_bounds = array<i64: 4, 32>}, {pipeline_mode = #tpu.pipeline_mode<synchronous>, transform_indices = @transform_1, window_bounds = array<i64: 32, 32>}, {pipeline_mode = #tpu.pipeline_mode<synchronous>, transform_indices = @transform_2, window_bounds = array<i64: 32, 32>}, {pipeline_mode = #tpu.pipeline_mode<synchronous>, transform_indices = @transform_3, window_bounds = array<i64: 32, 32>}, {pipeline_mode = #tpu.pipeline_mode<synchronous>, transform_indices = @transform_4, window_bounds = array<i64: 1, 32>}, {pipeline_mode = #tpu.pipeline_mode<synchronous>, transform_indices = @transform_5, window_bounds = array<i64: 1, 32>}, {pipeline_mode = #tpu.pipeline_mode<synchronous>, transform_indices = @transform_6, window_bounds = array<i64: 1, 32>}, {transform_indices = @transform_7, window_bounds = array<i64: 4, 32>}]} {
    %c0 = arith.constant 0 : index
    %c0_0 = arith.constant 0 : index
    %0 = vector.load %arg1[%c0, %c0_0] : memref<4x32xf32, #tpu.memory_space<vmem>>, vector<4x32xf32>
    %c0_1 = arith.constant 0 : index
    %c0_2 = arith.constant 0 : index
    %1 = vector.load %arg2[%c0_1, %c0_2] : memref<32x32xbf16, #tpu.memory_space<vmem>>, vector<32x32xbf16>
    %c0_3 = arith.constant 0 : index
    %c0_4 = arith.constant 0 : index
    %2 = vector.load %arg3[%c0_3, %c0_4] : memref<32x32xbf16, #tpu.memory_space<vmem>>, vector<32x32xbf16>
    %c0_5 = arith.constant 0 : index
    %c0_6 = arith.constant 0 : index
    %3 = vector.load %arg4[%c0_5, %c0_6] : memref<32x32xbf16, #tpu.memory_space<vmem>>, vector<32x32xbf16>
    %c0_7 = arith.constant 0 : index
    %c0_8 = arith.constant 0 : index
    %4 = vector.load %arg5[%c0_7, %c0_8] : memref<1x32xf32, #tpu.memory_space<vmem>>, vector<1x32xf32>
    %5 = vector.shape_cast %4 : vector<1x32xf32> to vector<1x32xf32>
    %6 = vector.broadcast %5 : vector<1x32xf32> to vector<4x32xf32>
    %c0_9 = arith.constant 0 : index
    %c0_10 = arith.constant 0 : index
    %7 = vector.load %arg6[%c0_9, %c0_10] : memref<1x32xf32, #tpu.memory_space<vmem>>, vector<1x32xf32>
    %8 = vector.shape_cast %7 : vector<1x32xf32> to vector<1x32xf32>
    %9 = vector.broadcast %8 : vector<1x32xf32> to vector<4x32xf32>
    %c0_11 = arith.constant 0 : index
    %c0_12 = arith.constant 0 : index
    %10 = vector.load %arg7[%c0_11, %c0_12] : memref<1x32xf32, #tpu.memory_space<vmem>>, vector<1x32xf32>
    %11 = vector.shape_cast %10 : vector<1x32xf32> to vector<1x32xf32>
    %12 = vector.broadcast %11 : vector<1x32xf32> to vector<4x32xf32>
    %cst = arith.constant 1.125000e+00 : f32
    %cst_13 = arith.constant 1.250000e-01 : f32
    %c0_i32 = arith.constant 0 : i32
    %13 = arith.truncf %0 : vector<4x32xf32> to vector<4x32xbf16>
    %cst_14 = arith.constant dense<0.000000e+00> : vector<4x32xf32>
    %14 = tpu.matmul %13, %1, %cst_14 {dimension_numbers = #tpu.dot_dimension_numbers<[1], [0], [0], [1], [0, 0, 1, 1], [], []>} : vector<4x32xbf16>, vector<32x32xbf16>, vector<4x32xf32> -> vector<4x32xf32>
    %15 = arith.addf %14, %6 : vector<4x32xf32>
    %cst_15 = arith.constant dense<0.000000e+00> : vector<4x32xf32>
    %16 = tpu.matmul %13, %2, %cst_15 {dimension_numbers = #tpu.dot_dimension_numbers<[1], [0], [0], [1], [0, 0, 1, 1], [], []>} : vector<4x32xbf16>, vector<32x32xbf16>, vector<4x32xf32> -> vector<4x32xf32>
    %17 = arith.addf %16, %9 : vector<4x32xf32>
    %cst_16 = arith.constant dense<0.000000e+00> : vector<4x32xf32>
    %18 = tpu.matmul %13, %3, %cst_16 {dimension_numbers = #tpu.dot_dimension_numbers<[1], [0], [0], [1], [0, 0, 1, 1], [], []>} : vector<4x32xbf16>, vector<32x32xbf16>, vector<4x32xf32> -> vector<4x32xf32>
    %19 = arith.addf %18, %12 : vector<4x32xf32>
    %20 = arith.negf %15 : vector<4x32xf32>
    %21 = math.exp %20 : vector<4x32xf32>
    %cst_17 = arith.constant 1.000000e+00 : f32
    %22 = vector.broadcast %cst_17 : f32 to vector<4x32xf32>
    %23 = arith.addf %22, %21 : vector<4x32xf32>
    %24 = arith.divf %22, %23 : vector<4x32xf32>
    %25 = arith.negf %17 : vector<4x32xf32>
    %26 = math.exp %25 : vector<4x32xf32>
    %cst_18 = arith.constant 1.000000e+00 : f32
    %27 = vector.broadcast %cst_18 : f32 to vector<4x32xf32>
    %28 = arith.addf %27, %26 : vector<4x32xf32>
    %29 = arith.divf %27, %28 : vector<4x32xf32>
    %30 = arith.mulf %24, %19 : vector<4x32xf32>
    %31 = math.tanh %30 : vector<4x32xf32>
    %32 = vector.broadcast %cst : f32 to vector<4x32xf32>
    %33 = arith.mulf %0, %32 : vector<4x32xf32>
    %34 = vector.broadcast %cst_13 : f32 to vector<4x32xf32>
    %35 = arith.mulf %34, %29 : vector<4x32xf32>
    %36 = arith.subf %31, %0 : vector<4x32xf32>
    %37 = arith.mulf %35, %36 : vector<4x32xf32>
    %38 = arith.addf %33, %37 : vector<4x32xf32>
    %c1_i32 = arith.constant 1 : i32
    %39 = arith.truncf %38 : vector<4x32xf32> to vector<4x32xbf16>
    %cst_19 = arith.constant dense<0.000000e+00> : vector<4x32xf32>
    %40 = tpu.matmul %39, %1, %cst_19 {dimension_numbers = #tpu.dot_dimension_numbers<[1], [0], [0], [1], [0, 0, 1, 1], [], []>} : vector<4x32xbf16>, vector<32x32xbf16>, vector<4x32xf32> -> vector<4x32xf32>
    %41 = arith.addf %40, %6 : vector<4x32xf32>
    %cst_20 = arith.constant dense<0.000000e+00> : vector<4x32xf32>
    %42 = tpu.matmul %39, %2, %cst_20 {dimension_numbers = #tpu.dot_dimension_numbers<[1], [0], [0], [1], [0, 0, 1, 1], [], []>} : vector<4x32xbf16>, vector<32x32xbf16>, vector<4x32xf32> -> vector<4x32xf32>
    %43 = arith.addf %42, %9 : vector<4x32xf32>
    %cst_21 = arith.constant dense<0.000000e+00> : vector<4x32xf32>
    %44 = tpu.matmul %39, %3, %cst_21 {dimension_numbers = #tpu.dot_dimension_numbers<[1], [0], [0], [1], [0, 0, 1, 1], [], []>} : vector<4x32xbf16>, vector<32x32xbf16>, vector<4x32xf32> -> vector<4x32xf32>
    %45 = arith.addf %44, %12 : vector<4x32xf32>
    %46 = arith.negf %41 : vector<4x32xf32>
    %47 = math.exp %46 : vector<4x32xf32>
    %cst_22 = arith.constant 1.000000e+00 : f32
    %48 = vector.broadcast %cst_22 : f32 to vector<4x32xf32>
    %49 = arith.addf %48, %47 : vector<4x32xf32>
    %50 = arith.divf %48, %49 : vector<4x32xf32>
    %51 = arith.negf %43 : vector<4x32xf32>
    %52 = math.exp %51 : vector<4x32xf32>
    %cst_23 = arith.constant 1.000000e+00 : f32
    %53 = vector.broadcast %cst_23 : f32 to vector<4x32xf32>
    %54 = arith.addf %53, %52 : vector<4x32xf32>
    %55 = arith.divf %53, %54 : vector<4x32xf32>
    %56 = arith.mulf %50, %45 : vector<4x32xf32>
    %57 = math.tanh %56 : vector<4x32xf32>
    %58 = vector.broadcast %cst : f32 to vector<4x32xf32>
    %59 = arith.mulf %38, %58 : vector<4x32xf32>
    %60 = vector.broadcast %cst_13 : f32 to vector<4x32xf32>
    %61 = arith.mulf %60, %55 : vector<4x32xf32>
    %62 = arith.subf %57, %38 : vector<4x32xf32>
    %63 = arith.mulf %61, %62 : vector<4x32xf32>
    %64 = arith.addf %59, %63 : vector<4x32xf32>
    %c2_i32 = arith.constant 2 : i32
    %65 = arith.truncf %64 : vector<4x32xf32> to vector<4x32xbf16>
    %cst_24 = arith.constant dense<0.000000e+00> : vector<4x32xf32>
    %66 = tpu.matmul %65, %1, %cst_24 {dimension_numbers = #tpu.dot_dimension_numbers<[1], [0], [0], [1], [0, 0, 1, 1], [], []>} : vector<4x32xbf16>, vector<32x32xbf16>, vector<4x32xf32> -> vector<4x32xf32>
    %67 = arith.addf %66, %6 : vector<4x32xf32>
    %cst_25 = arith.constant dense<0.000000e+00> : vector<4x32xf32>
    %68 = tpu.matmul %65, %2, %cst_25 {dimension_numbers = #tpu.dot_dimension_numbers<[1], [0], [0], [1], [0, 0, 1, 1], [], []>} : vector<4x32xbf16>, vector<32x32xbf16>, vector<4x32xf32> -> vector<4x32xf32>
    %69 = arith.addf %68, %9 : vector<4x32xf32>
    %cst_26 = arith.constant dense<0.000000e+00> : vector<4x32xf32>
    %70 = tpu.matmul %65, %3, %cst_26 {dimension_numbers = #tpu.dot_dimension_numbers<[1], [0], [0], [1], [0, 0, 1, 1], [], []>} : vector<4x32xbf16>, vector<32x32xbf16>, vector<4x32xf32> -> vector<4x32xf32>
    %71 = arith.addf %70, %12 : vector<4x32xf32>
    %72 = arith.negf %67 : vector<4x32xf32>
    %73 = math.exp %72 : vector<4x32xf32>
    %cst_27 = arith.constant 1.000000e+00 : f32
    %74 = vector.broadcast %cst_27 : f32 to vector<4x32xf32>
    %75 = arith.addf %74, %73 : vector<4x32xf32>
    %76 = arith.divf %74, %75 : vector<4x32xf32>
    %77 = arith.negf %69 : vector<4x32xf32>
    %78 = math.exp %77 : vector<4x32xf32>
    %cst_28 = arith.constant 1.000000e+00 : f32
    %79 = vector.broadcast %cst_28 : f32 to vector<4x32xf32>
    %80 = arith.addf %79, %78 : vector<4x32xf32>
    %81 = arith.divf %79, %80 : vector<4x32xf32>
    %82 = arith.mulf %76, %71 : vector<4x32xf32>
    %83 = math.tanh %82 : vector<4x32xf32>
    %84 = vector.broadcast %cst : f32 to vector<4x32xf32>
    %85 = arith.mulf %64, %84 : vector<4x32xf32>
    %86 = vector.broadcast %cst_13 : f32 to vector<4x32xf32>
    %87 = arith.mulf %86, %81 : vector<4x32xf32>
    %88 = arith.subf %83, %64 : vector<4x32xf32>
    %89 = arith.mulf %87, %88 : vector<4x32xf32>
    %90 = arith.addf %85, %89 : vector<4x32xf32>
    %c3_i32 = arith.constant 3 : i32
    %91 = arith.truncf %90 : vector<4x32xf32> to vector<4x32xbf16>
    %cst_29 = arith.constant dense<0.000000e+00> : vector<4x32xf32>
    %92 = tpu.matmul %91, %1, %cst_29 {dimension_numbers = #tpu.dot_dimension_numbers<[1], [0], [0], [1], [0, 0, 1, 1], [], []>} : vector<4x32xbf16>, vector<32x32xbf16>, vector<4x32xf32> -> vector<4x32xf32>
    %93 = arith.addf %92, %6 : vector<4x32xf32>
    %cst_30 = arith.constant dense<0.000000e+00> : vector<4x32xf32>
    %94 = tpu.matmul %91, %2, %cst_30 {dimension_numbers = #tpu.dot_dimension_numbers<[1], [0], [0], [1], [0, 0, 1, 1], [], []>} : vector<4x32xbf16>, vector<32x32xbf16>, vector<4x32xf32> -> vector<4x32xf32>
    %95 = arith.addf %94, %9 : vector<4x32xf32>
    %cst_31 = arith.constant dense<0.000000e+00> : vector<4x32xf32>
    %96 = tpu.matmul %91, %3, %cst_31 {dimension_numbers = #tpu.dot_dimension_numbers<[1], [0], [0], [1], [0, 0, 1, 1], [], []>} : vector<4x32xbf16>, vector<32x32xbf16>, vector<4x32xf32> -> vector<4x32xf32>
    %97 = arith.addf %96, %12 : vector<4x32xf32>
    %98 = arith.negf %93 : vector<4x32xf32>
    %99 = math.exp %98 : vector<4x32xf32>
    %cst_32 = arith.constant 1.000000e+00 : f32
    %100 = vector.broadcast %cst_32 : f32 to vector<4x32xf32>
    %101 = arith.addf %100, %99 : vector<4x32xf32>
    %102 = arith.divf %100, %101 : vector<4x32xf32>
    %103 = arith.negf %95 : vector<4x32xf32>
    %104 = math.exp %103 : vector<4x32xf32>
    %cst_33 = arith.constant 1.000000e+00 : f32
    %105 = vector.broadcast %cst_33 : f32 to vector<4x32xf32>
    %106 = arith.addf %105, %104 : vector<4x32xf32>
    %107 = arith.divf %105, %106 : vector<4x32xf32>
    %108 = arith.mulf %102, %97 : vector<4x32xf32>
    %109 = math.tanh %108 : vector<4x32xf32>
    %110 = vector.broadcast %cst : f32 to vector<4x32xf32>
    %111 = arith.mulf %90, %110 : vector<4x32xf32>
    %112 = vector.broadcast %cst_13 : f32 to vector<4x32xf32>
    %113 = arith.mulf %112, %107 : vector<4x32xf32>
    %114 = arith.subf %109, %90 : vector<4x32xf32>
    %115 = arith.mulf %113, %114 : vector<4x32xf32>
    %116 = arith.addf %111, %115 : vector<4x32xf32>
    %c4_i32 = arith.constant 4 : i32
    %117 = arith.truncf %116 : vector<4x32xf32> to vector<4x32xbf16>
    %cst_34 = arith.constant dense<0.000000e+00> : vector<4x32xf32>
    %118 = tpu.matmul %117, %1, %cst_34 {dimension_numbers = #tpu.dot_dimension_numbers<[1], [0], [0], [1], [0, 0, 1, 1], [], []>} : vector<4x32xbf16>, vector<32x32xbf16>, vector<4x32xf32> -> vector<4x32xf32>
    %119 = arith.addf %118, %6 : vector<4x32xf32>
    %cst_35 = arith.constant dense<0.000000e+00> : vector<4x32xf32>
    %120 = tpu.matmul %117, %2, %cst_35 {dimension_numbers = #tpu.dot_dimension_numbers<[1], [0], [0], [1], [0, 0, 1, 1], [], []>} : vector<4x32xbf16>, vector<32x32xbf16>, vector<4x32xf32> -> vector<4x32xf32>
    %121 = arith.addf %120, %9 : vector<4x32xf32>
    %cst_36 = arith.constant dense<0.000000e+00> : vector<4x32xf32>
    %122 = tpu.matmul %117, %3, %cst_36 {dimension_numbers = #tpu.dot_dimension_numbers<[1], [0], [0], [1], [0, 0, 1, 1], [], []>} : vector<4x32xbf16>, vector<32x32xbf16>, vector<4x32xf32> -> vector<4x32xf32>
    %123 = arith.addf %122, %12 : vector<4x32xf32>
    %124 = arith.negf %119 : vector<4x32xf32>
    %125 = math.exp %124 : vector<4x32xf32>
    %cst_37 = arith.constant 1.000000e+00 : f32
    %126 = vector.broadcast %cst_37 : f32 to vector<4x32xf32>
    %127 = arith.addf %126, %125 : vector<4x32xf32>
    %128 = arith.divf %126, %127 : vector<4x32xf32>
    %129 = arith.negf %121 : vector<4x32xf32>
    %130 = math.exp %129 : vector<4x32xf32>
    %cst_38 = arith.constant 1.000000e+00 : f32
    %131 = vector.broadcast %cst_38 : f32 to vector<4x32xf32>
    %132 = arith.addf %131, %130 : vector<4x32xf32>
    %133 = arith.divf %131, %132 : vector<4x32xf32>
    %134 = arith.mulf %128, %123 : vector<4x32xf32>
    %135 = math.tanh %134 : vector<4x32xf32>
    %136 = vector.broadcast %cst : f32 to vector<4x32xf32>
    %137 = arith.mulf %116, %136 : vector<4x32xf32>
    %138 = vector.broadcast %cst_13 : f32 to vector<4x32xf32>
    %139 = arith.mulf %138, %133 : vector<4x32xf32>
    %140 = arith.subf %135, %116 : vector<4x32xf32>
    %141 = arith.mulf %139, %140 : vector<4x32xf32>
    %142 = arith.addf %137, %141 : vector<4x32xf32>
    %c5_i32 = arith.constant 5 : i32
    %143 = arith.truncf %142 : vector<4x32xf32> to vector<4x32xbf16>
    %cst_39 = arith.constant dense<0.000000e+00> : vector<4x32xf32>
    %144 = tpu.matmul %143, %1, %cst_39 {dimension_numbers = #tpu.dot_dimension_numbers<[1], [0], [0], [1], [0, 0, 1, 1], [], []>} : vector<4x32xbf16>, vector<32x32xbf16>, vector<4x32xf32> -> vector<4x32xf32>
    %145 = arith.addf %144, %6 : vector<4x32xf32>
    %cst_40 = arith.constant dense<0.000000e+00> : vector<4x32xf32>
    %146 = tpu.matmul %143, %2, %cst_40 {dimension_numbers = #tpu.dot_dimension_numbers<[1], [0], [0], [1], [0, 0, 1, 1], [], []>} : vector<4x32xbf16>, vector<32x32xbf16>, vector<4x32xf32> -> vector<4x32xf32>
    %147 = arith.addf %146, %9 : vector<4x32xf32>
    %cst_41 = arith.constant dense<0.000000e+00> : vector<4x32xf32>
    %148 = tpu.matmul %143, %3, %cst_41 {dimension_numbers = #tpu.dot_dimension_numbers<[1], [0], [0], [1], [0, 0, 1, 1], [], []>} : vector<4x32xbf16>, vector<32x32xbf16>, vector<4x32xf32> -> vector<4x32xf32>
    %149 = arith.addf %148, %12 : vector<4x32xf32>
    %150 = arith.negf %145 : vector<4x32xf32>
    %151 = math.exp %150 : vector<4x32xf32>
    %cst_42 = arith.constant 1.000000e+00 : f32
    %152 = vector.broadcast %cst_42 : f32 to vector<4x32xf32>
    %153 = arith.addf %152, %151 : vector<4x32xf32>
    %154 = arith.divf %152, %153 : vector<4x32xf32>
    %155 = arith.negf %147 : vector<4x32xf32>
    %156 = math.exp %155 : vector<4x32xf32>
    %cst_43 = arith.constant 1.000000e+00 : f32
    %157 = vector.broadcast %cst_43 : f32 to vector<4x32xf32>
    %158 = arith.addf %157, %156 : vector<4x32xf32>
    %159 = arith.divf %157, %158 : vector<4x32xf32>
    %160 = arith.mulf %154, %149 : vector<4x32xf32>
    %161 = math.tanh %160 : vector<4x32xf32>
    %162 = vector.broadcast %cst : f32 to vector<4x32xf32>
    %163 = arith.mulf %142, %162 : vector<4x32xf32>
    %164 = vector.broadcast %cst_13 : f32 to vector<4x32xf32>
    %165 = arith.mulf %164, %159 : vector<4x32xf32>
    %166 = arith.subf %161, %142 : vector<4x32xf32>
    %167 = arith.mulf %165, %166 : vector<4x32xf32>
    %168 = arith.addf %163, %167 : vector<4x32xf32>
    %c6_i32 = arith.constant 6 : i32
    %169 = arith.truncf %168 : vector<4x32xf32> to vector<4x32xbf16>
    %cst_44 = arith.constant dense<0.000000e+00> : vector<4x32xf32>
    %170 = tpu.matmul %169, %1, %cst_44 {dimension_numbers = #tpu.dot_dimension_numbers<[1], [0], [0], [1], [0, 0, 1, 1], [], []>} : vector<4x32xbf16>, vector<32x32xbf16>, vector<4x32xf32> -> vector<4x32xf32>
    %171 = arith.addf %170, %6 : vector<4x32xf32>
    %cst_45 = arith.constant dense<0.000000e+00> : vector<4x32xf32>
    %172 = tpu.matmul %169, %2, %cst_45 {dimension_numbers = #tpu.dot_dimension_numbers<[1], [0], [0], [1], [0, 0, 1, 1], [], []>} : vector<4x32xbf16>, vector<32x32xbf16>, vector<4x32xf32> -> vector<4x32xf32>
    %173 = arith.addf %172, %9 : vector<4x32xf32>
    %cst_46 = arith.constant dense<0.000000e+00> : vector<4x32xf32>
    %174 = tpu.matmul %169, %3, %cst_46 {dimension_numbers = #tpu.dot_dimension_numbers<[1], [0], [0], [1], [0, 0, 1, 1], [], []>} : vector<4x32xbf16>, vector<32x32xbf16>, vector<4x32xf32> -> vector<4x32xf32>
    %175 = arith.addf %174, %12 : vector<4x32xf32>
    %176 = arith.negf %171 : vector<4x32xf32>
    %177 = math.exp %176 : vector<4x32xf32>
    %cst_47 = arith.constant 1.000000e+00 : f32
    %178 = vector.broadcast %cst_47 : f32 to vector<4x32xf32>
    %179 = arith.addf %178, %177 : vector<4x32xf32>
    %180 = arith.divf %178, %179 : vector<4x32xf32>
    %181 = arith.negf %173 : vector<4x32xf32>
    %182 = math.exp %181 : vector<4x32xf32>
    %cst_48 = arith.constant 1.000000e+00 : f32
    %183 = vector.broadcast %cst_48 : f32 to vector<4x32xf32>
    %184 = arith.addf %183, %182 : vector<4x32xf32>
    %185 = arith.divf %183, %184 : vector<4x32xf32>
    %186 = arith.mulf %180, %175 : vector<4x32xf32>
    %187 = math.tanh %186 : vector<4x32xf32>
    %188 = vector.broadcast %cst : f32 to vector<4x32xf32>
    %189 = arith.mulf %168, %188 : vector<4x32xf32>
    %190 = vector.broadcast %cst_13 : f32 to vector<4x32xf32>
    %191 = arith.mulf %190, %185 : vector<4x32xf32>
    %192 = arith.subf %187, %168 : vector<4x32xf32>
    %193 = arith.mulf %191, %192 : vector<4x32xf32>
    %194 = arith.addf %189, %193 : vector<4x32xf32>
    %c7_i32 = arith.constant 7 : i32
    %195 = arith.truncf %194 : vector<4x32xf32> to vector<4x32xbf16>
    %cst_49 = arith.constant dense<0.000000e+00> : vector<4x32xf32>
    %196 = tpu.matmul %195, %1, %cst_49 {dimension_numbers = #tpu.dot_dimension_numbers<[1], [0], [0], [1], [0, 0, 1, 1], [], []>} : vector<4x32xbf16>, vector<32x32xbf16>, vector<4x32xf32> -> vector<4x32xf32>
    %197 = arith.addf %196, %6 : vector<4x32xf32>
    %cst_50 = arith.constant dense<0.000000e+00> : vector<4x32xf32>
    %198 = tpu.matmul %195, %2, %cst_50 {dimension_numbers = #tpu.dot_dimension_numbers<[1], [0], [0], [1], [0, 0, 1, 1], [], []>} : vector<4x32xbf16>, vector<32x32xbf16>, vector<4x32xf32> -> vector<4x32xf32>
    %199 = arith.addf %198, %9 : vector<4x32xf32>
    %cst_51 = arith.constant dense<0.000000e+00> : vector<4x32xf32>
    %200 = tpu.matmul %195, %3, %cst_51 {dimension_numbers = #tpu.dot_dimension_numbers<[1], [0], [0], [1], [0, 0, 1, 1], [], []>} : vector<4x32xbf16>, vector<32x32xbf16>, vector<4x32xf32> -> vector<4x32xf32>
    %201 = arith.addf %200, %12 : vector<4x32xf32>
    %202 = arith.negf %197 : vector<4x32xf32>
    %203 = math.exp %202 : vector<4x32xf32>
    %cst_52 = arith.constant 1.000000e+00 : f32
    %204 = vector.broadcast %cst_52 : f32 to vector<4x32xf32>
    %205 = arith.addf %204, %203 : vector<4x32xf32>
    %206 = arith.divf %204, %205 : vector<4x32xf32>
    %207 = arith.negf %199 : vector<4x32xf32>
    %208 = math.exp %207 : vector<4x32xf32>
    %cst_53 = arith.constant 1.000000e+00 : f32
    %209 = vector.broadcast %cst_53 : f32 to vector<4x32xf32>
    %210 = arith.addf %209, %208 : vector<4x32xf32>
    %211 = arith.divf %209, %210 : vector<4x32xf32>
    %212 = arith.mulf %206, %201 : vector<4x32xf32>
    %213 = math.tanh %212 : vector<4x32xf32>
    %214 = vector.broadcast %cst : f32 to vector<4x32xf32>
    %215 = arith.mulf %194, %214 : vector<4x32xf32>
    %216 = vector.broadcast %cst_13 : f32 to vector<4x32xf32>
    %217 = arith.mulf %216, %211 : vector<4x32xf32>
    %218 = arith.subf %213, %194 : vector<4x32xf32>
    %219 = arith.mulf %217, %218 : vector<4x32xf32>
    %220 = arith.addf %215, %219 : vector<4x32xf32>
    %c0_54 = arith.constant 0 : index
    %c0_55 = arith.constant 0 : index
    %221 = vector.load %arg8[%c0_54, %c0_55] : memref<4x32xf32, #tpu.memory_space<vmem>>, vector<4x32xf32>
    tpu.vector_store %arg8[%c0_54, %c0_55], %220 {strides = array<i32>} : memref<4x32xf32, #tpu.memory_space<vmem>>, vector<4x32xf32>,
    return
  }
  func.func @transform_0(%arg0: i32) -> (i32, i32) {
    %c0_i32 = arith.constant 0 : i32
    %c0_i32_0 = arith.constant 0 : i32
    return %arg0, %c0_i32 : i32, i32
  }
  func.func @transform_1(%arg0: i32) -> (i32, i32) {
    %c0_i32 = arith.constant 0 : i32
    %c0_i32_0 = arith.constant 0 : i32
    %c0_i32_1 = arith.constant 0 : i32
    return %c0_i32, %c0_i32_0 : i32, i32
  }
  func.func @transform_2(%arg0: i32) -> (i32, i32) {
    %c0_i32 = arith.constant 0 : i32
    %c0_i32_0 = arith.constant 0 : i32
    %c0_i32_1 = arith.constant 0 : i32
    return %c0_i32, %c0_i32_0 : i32, i32
  }
  func.func @transform_3(%arg0: i32) -> (i32, i32) {
    %c0_i32 = arith.constant 0 : i32
    %c0_i32_0 = arith.constant 0 : i32
    %c0_i32_1 = arith.constant 0 : i32
    return %c0_i32, %c0_i32_0 : i32, i32
  }
  func.func @transform_4(%arg0: i32) -> (i32, i32) {
    %c0_i32 = arith.constant 0 : i32
    %c0_i32_0 = arith.constant 0 : i32
    %c0_i32_1 = arith.constant 0 : i32
    return %c0_i32, %c0_i32_0 : i32, i32
  }
  func.func @transform_5(%arg0: i32) -> (i32, i32) {
    %c0_i32 = arith.constant 0 : i32
    %c0_i32_0 = arith.constant 0 : i32
    %c0_i32_1 = arith.constant 0 : i32
    return %c0_i32, %c0_i32_0 : i32, i32
  }
  func.func @transform_6(%arg0: i32) -> (i32, i32) {
    %c0_i32 = arith.constant 0 : i32
    %c0_i32_0 = arith.constant 0 : i32
    %c0_i32_1 = arith.constant 0 : i32
    return %c0_i32, %c0_i32_0 : i32, i32
  }
  func.func @transform_7(%arg0: i32) -> (i32, i32) {
    %c0_i32 = arith.constant 0 : i32
    %c0_i32_0 = arith.constant 0 : i32
    return %arg0, %c0_i32 : i32, i32
  }
}

</mosaic_0001>

<bundles_post_ra>
// kernel: tpu_custom_call.1
= control target key start
LH: loop header
LB: loop body
LE: loop exit
PB: predicated region body
PF: predicated region fallthrough
CT: control target
= control target key end

     0   :  { %12 = vsyncpa [#allocation3], 0  ;;  %s1379_s0 = inlined_call_operand.hbm [shape: f32[4,32], index: 0, kind: input, shape index: {}]   ;;  %s1380_s1 = inlined_call_operand.hbm [shape: bf16[32,32], index: 1, kind: input, shape index: {}]   ;;  %s1381_s2 = inlined_call_operand.hbm [shape: bf16[32,32], index: 2, kind: input, shape index: {}]   ;;  %s1382_s3 = inlined_call_operand.hbm [shape: bf16[32,32], index: 3, kind: input, shape index: {}]   ;;  %s1383_s4 = inlined_call_operand.vmem [shape: f32[1,32], index: 4, kind: input, shape index: {}]   ;;  %s1384_s5 = inlined_call_operand.vmem [shape: f32[1,32], index: 5, kind: input, shape index: {}]   ;;  %s1385_s6 = inlined_call_operand.vmem [shape: f32[1,32], index: 6, kind: input, shape index: {}]   ;;  %s1386_s7 = inlined_call_operand.hbm [shape: f32[4,32], index: 7, kind: output, shape index: {}]  }
   0x1   :  { %13 = vsyncpa [#allocation6], 0 }
   0x2   :  { %14 = vsyncpa [#allocation9], 0  ;;  %s31_s26 = sshll.u32 %s1380_s1, 4  ;;  %s32_s26 = int_to_ptr.hbm [resolvable:$true] %s31_s26 }
   0x3   :  { %15 = vsyncpa [#allocation4], 0  ;;  %s1164_s27 = smov [#allocation5]   ;;  %s21_s8 = sshll.u32 %s1379_s0, 4  ;;  %s22_s8 = int_to_ptr.hbm [resolvable:$true] %s21_s8 }
   0x4   :  { %s33_s28 = sshll.u32 %s1164_s27, 4  ;;  %s1165_s9 = smov 64   ;;  %s34_s28 = int_to_ptr.vmem [resolvable:$true] %s33_s28 }
   0x5   :  { %s1166_s10 = smov 4   ;;  %s1167_s11 = smov [#allocation2]  }
   0x6   :  { %39 = dma.hbm_to_vmem [thread:$0]  %s32_s26, 256, %s34_s28, [#allocation6], %s1165_s9, %s1165_s9, %s1166_s10  }
   0x7   :  { %s23_s12 = sshll.u32 %s1167_s11, 4  ;;  %s44_s15 = sshll.u32 %s1381_s2, 4  ;;  %s24_s12 = int_to_ptr.vmem [resolvable:$true] %s23_s12  ;;  %s45_s15 = int_to_ptr.hbm [resolvable:$true] %s44_s15 }
   0x8   :  { %26 = dma.hbm_to_vmem [thread:$0]  %s22_s8, 64, %s24_s12, [#allocation3]  }
   0x9   :  { %s57_s17 = sshll.u32 %s1382_s3, 4  ;;  %s1168_s18 = smov [#allocation7]   ;;  %s58_s17 = int_to_ptr.hbm [resolvable:$true] %s57_s17 }
   0xa   :  { %s46_s19 = sshll.u32 %s1168_s18, 4  ;;  %s1169_s0 = smov [#allocation8]   ;;  %s47_s19 = int_to_ptr.vmem [resolvable:$true] %s46_s19 }
   0xb   :  { %52 = dma.hbm_to_vmem [thread:$0]  %s45_s15, 256, %s47_s19, [#allocation6], %s1165_s9, %s1165_s9, %s1166_s10  }
   0xc   :  { %s59_s20 = sshll.u32 %s1169_s0, 4  ;;  %s60_s20 = int_to_ptr.vmem [resolvable:$true] %s59_s20 }
   0xd   :  { %65 = dma.hbm_to_vmem [thread:$0]  %s58_s17, 256, %s60_s20, [#allocation9], %s1165_s9, %s1165_s9, %s1166_s10  }
   0xe   :  { %1156 = dma.done.wait [#allocation3], 64  }
   0xf   :  { %1157 = vsyncadd [#allocation3], 4294967232 }
  0x10   :  { %1158 = dma.done.wait [#allocation6], 512  }
  0x11   :  { %1159 = vsyncadd [#allocation6], 4294966784 }
  0x12   :  { %1160 = dma.done.wait [#allocation9], 256  }
  0x13   :  { %1161 = vsyncadd [#allocation9], 4294967040  ;;  %v1223_v0 = vld [vmem:[#allocation5 + $0x8] sm:$0xff]  ;;  %v1225_v1 = vld [vmem:[#allocation7 + $0x8] sm:$0xff]  ;;  %vm127_vm0 = vcmask 261120   ;;  %s864_s26 = sshll.u32 %s1386_s7, 4  ;;  %s865_s26 = int_to_ptr.hbm [resolvable:$true] %s864_s26 }
  0x14   :  { %v1227_v2 = vld [vmem:[#allocation5] sm:$0xff]  ;;  %v1229_v3 = vld [vmem:[#allocation8 + $0x8] sm:$0xff]  ;;  %137 = vmatpush.bf16.msra.mxu0 %v1223_v0  ;;  %162 = vmatpush.bf16.msra.mxu1 %v1225_v1  ;;  %v1233_v4 = vld [vmem:[#allocation7] sm:$0xff] }
  0x15   :  { %v1235_v5 = vld [vmem:[#allocation2] sm:$0xf]  ;;  %187 = vmatpush.bf16.msra.mxu2 %v1229_v3  ;;  %v1238_v6 = vld [vmem:[#allocation8] sm:$0xff]  ;;  %249 = vmatpush.bf16.msra.mxu3 %v1223_v0 }
  0x16   :  { %v114_v7 = vpack.c.bf16 %v1235_v5, %v1235_v5  ;;  %v1267_v8 = vld [vmem:[%s1383_s4] ss:$0 sm:$0xff]  ;;  %v234_v48 = vmul.f32 1.125, %v1235_v5 }
  0x17   :  { %v1272_v9 = vld [vmem:[%s1384_s5] ss:$0 sm:$0xff] }
  0x18   :  { %138 = vmatpush.bf16.msra.mxu0 %v1227_v2  ;;  %163 = vmatpush.bf16.msra.mxu1 %v1233_v4  ;;  %v1279_v28 = vld [vmem:[%s1385_s6] ss:$0 sm:$0xff]  ;;  %s1170_s6 = smov [#allocation10]  }
  0x19   :  { %188 = vmatpush.bf16.msra.mxu2 %v1238_v6  ;;  %250 = vmatpush.bf16.msra.mxu3 %v1227_v2  ;;  %s862_s23 = sshll.u32 %s1170_s6, 4  ;;  %s863_s23 = int_to_ptr.vmem [resolvable:$true] %s862_s23 }
  0x1b   :  { %884 = vmatmul.msk.bf16.vlgmr.msra.gmra.mxu0 %vm127_vm0, %v114_v7  ;;  %893 = vmatmul.msk.bf16.vlgmr.msra.gmra.mxu1 %vm127_vm0, %v114_v7 }
  0x1c   :  { %262 = vmatpush.bf16.msrb.mxu0 %v1225_v1  ;;  %275 = vmatpush.bf16.msrb.mxu1 %v1229_v3 }
  0x1d   :  { %902 = vmatmul.msk.bf16.vlgmr.msra.gmra.mxu2 %vm127_vm0, %v114_v7  ;;  %350 = vmatpush.bf16.msrb.mxu3 %v1225_v1 }
  0x1e   :  { %337 = vmatpush.bf16.msrb.mxu2 %v1223_v0 }
  0x20   :  { %263 = vmatpush.bf16.msrb.mxu0 %v1233_v4  ;;  %276 = vmatpush.bf16.msrb.mxu1 %v1238_v6 }
  0x21   :  { %351 = vmatpush.bf16.msrb.mxu3 %v1233_v4 }
  0x22   :  { %338 = vmatpush.bf16.msrb.mxu2 %v1227_v2 }
  0x24   :  { %363 = vmatpush.bf16.msra.mxu0 %v1229_v3  ;;  %425 = vmatpush.bf16.msra.mxu1 %v1223_v0 }
  0x26   :  { %438 = vmatpush.bf16.msra.mxu2 %v1225_v1 }
  0x28   :  { %364 = vmatpush.bf16.msra.mxu0 %v1238_v6  ;;  %426 = vmatpush.bf16.msra.mxu1 %v1227_v2 }
  0x2a   :  { %439 = vmatpush.bf16.msra.mxu2 %v1233_v4 }
  0x98   :  { %v140_v10 = vpop.f32.mrf.mxu0  ;;  %v165_v11 = vpop.f32.mrf.mxu1 }
  0x99   :  { %v141_v12 = vadd.f32 %v1267_v8, %v140_v10  ;;  %v166_v13 = vadd.f32 %v1272_v9, %v165_v11 }
  0x9b   :  { %v903_v14 = vmul.f32 -1.442695, %v141_v12  ;;  %v904_v15 = vmul.f32 -1.442695, %v166_v13 }
  0x9d   :  { %956 = vpow2.f32 %v903_v14 }
  0x9e   :  { %958 = vpow2.f32 %v904_v15 }
  0xa0   :  { %v190_v16 = vpop.f32.mrf.mxu2  ;;  %v142_v17 = vpop.f32.mrf.mxu0 }
  0xa1   :  { %v167_v18 = vpop.f32.mrf.mxu1  ;;  %v191_v35 = vadd.f32 %v1279_v28, %v190_v16 }
  0xa3   :  { %v957_v19 = vpop.eup %956 }
  0xa4   :  { %v959_v20 = vpop.eup %958  ;;  %v197_v21 = vadd.f32 1.0, %v957_v19 }
  0xa5   :  { %v216_v22 = vadd.f32 1.0, %v959_v20 }
  0xa6   :  { %960 = vrcp.f32 %v197_v21  ;;  %v209_v31 = vand.u32 2147483648, %v197_v21  ;;  %v207_v33 = vand.u32 2147483647, %v197_v21  ;;  %vm203_vm2 = vweird.f32 %v197_v21 }
  0xa7   :  { %962 = vrcp.f32 %v216_v22  ;;  %vm222_vm5 = vweird.f32 %v216_v22  ;;  %v228_v41 = vand.u32 2147483648, %v216_v22  ;;  %v226_v43 = vand.u32 2147483647, %v216_v22 }
  0xa8   :  { %v192_v23 = vpop.f32.mrf.mxu2  ;;  %v210_v37 = vor.u32 1.1754944e-38, %v209_v31  ;;  %vm208_vm4 = vcmp.eq.f32.partialorder %v207_v33, 8.507059e+37 }
  0xa9   :  { %v229_v45 = vor.u32 1.1754944e-38, %v228_v41  ;;  %vm227_vm8 = vcmp.eq.f32.partialorder %v226_v43, 8.507059e+37 }
  0xac   :  { %v961_v24 = vpop.eup %960 }
  0xad   :  { %v963_v25 = vpop.eup %962  ;;  %v199_v26 = vmul.f32 %v961_v24, %v197_v21  ;;  %vm204_vm1 = vweird.f32 %v961_v24 }
  0xae   :  { %v218_v27 = vmul.f32 %v963_v25, %v216_v22  ;;  %vm205_vm3 = vmor %vm203_vm2, %vm204_vm1  ;;  %vm223_vm6 = vweird.f32 %v963_v25 }
  0xaf   :  { %v200_v29 = vsub.f32 1.0, %v199_v26  ;;  %vm224_vm7 = vmor %vm222_vm5, %vm223_vm6 }
  0xb0   :  { %v219_v30 = vsub.f32 1.0, %v218_v27 }
  0xb1   :  { %v201_v32 = vmul.f32 %v961_v24, %v200_v29 }
  0xb2   :  { %v220_v34 = vmul.f32 %v963_v25, %v219_v30 }
  0xb3   :  { %v202_v36 = vadd.f32 %v961_v24, %v201_v32 }
  0xb4   :  { %v221_v40 = vadd.f32 %v963_v25, %v220_v34 }
  0xb5   :  { %v206_v38 = vsel %vm205_vm3, %v961_v24, %v202_v36 }
  0xb6   :  { %v211_v39 = vsel %vm208_vm4, %v210_v37, %v206_v38  ;;  %v225_v44 = vsel %vm224_vm7, %v963_v25, %v221_v40 }
  0xb7   :  { %v232_v42 = vmul.f32 %v211_v39, %v191_v35  ;;  %v230_v46 = vsel %vm227_vm8, %v229_v45, %v225_v44 }
  0xb8   :  { %v235_v50 = vmul.f32 0.125, %v230_v46 }
  0xb9   :  { %964 = vtanh.f32 %v232_v42 }
  0xbf   :  { %v965_v47 = vpop.eup %964 }
  0xc0   :  { %v236_v49 = vsub.f32 %v965_v47, %v1235_v5 }
  0xc2   :  { %v237_v51 = vmul.f32 %v236_v49, %v235_v50 }
  0xc4   :  { %v1284_v52 = vadd.f32 %v237_v51, %v234_v48 }
  0xc6   :  { %v239_v53 = vpack.c.bf16 %v1284_v52, %v1284_v52  ;;  %v322_v38 = vmul.f32 1.125, %v1284_v52 }
  0xc8   :  { %905 = vmatmul.msk.bf16.vlgmr.msra.gmra.mxu3 %vm127_vm0, %v239_v53  ;;  %906 = vmatmul.msk.bf16.vlgmr.msrb.gmra.mxu0 %vm127_vm0, %v239_v53 }
  0xc9   :  { %907 = vmatmul.msk.bf16.vlgmr.msrb.gmra.mxu1 %vm127_vm0, %v239_v53  ;;  %451 = vmatpush.bf16.msra.mxu3 %v1229_v3 }
  0xca   :  { %513 = vmatpush.bf16.msrb.mxu0 %v1223_v0  ;;  %526 = vmatpush.bf16.msrb.mxu1 %v1225_v1 }
  0xcd   :  { %452 = vmatpush.bf16.msra.mxu3 %v1238_v6 }
  0xce   :  { %514 = vmatpush.bf16.msrb.mxu0 %v1227_v2  ;;  %527 = vmatpush.bf16.msrb.mxu1 %v1233_v4 }
 0x145   :  { %v265_v54 = vpop.f32.mrf.mxu0 }
 0x146   :  { %v266_v55 = vadd.f32 %v1272_v9, %v265_v54  ;;  %v278_v56 = vpop.f32.mrf.mxu1 }
 0x147   :  { %v279_v24 = vadd.f32 %v1279_v28, %v278_v56 }
 0x148   :  { %v909_v57 = vmul.f32 -1.442695, %v266_v55 }
 0x14a   :  { %966 = vpow2.f32 %v909_v57 }
 0x14b   :  { %v252_v58 = vpop.f32.mrf.mxu3 }
 0x14c   :  { %v253_v59 = vadd.f32 %v1267_v8, %v252_v58 }
 0x14d   :  { %v267_v60 = vpop.f32.mrf.mxu0 }
 0x14e   :  { %v908_v61 = vmul.f32 -1.442695, %v253_v59  ;;  %v280_v62 = vpop.f32.mrf.mxu1 }
 0x150   :  { %v967_v63 = vpop.eup %966  ;;  %968 = vpow2.f32 %v908_v61 }
 0x151   :  { %v304_v5 = vadd.f32 1.0, %v967_v63 }
 0x153   :  { %v254_v7 = vpop.f32.mrf.mxu3  ;;  %970 = vrcp.f32 %v304_v5  ;;  %v316_v29 = vand.u32 2147483648, %v304_v5  ;;  %vm310_vm14 = vweird.f32 %v304_v5  ;;  %v314_v31 = vand.u32 2147483647, %v304_v5 }
 0x155   :  { %v317_v33 = vor.u32 1.1754944e-38, %v316_v29  ;;  %vm315_vm1 = vcmp.eq.f32.partialorder %v314_v31, 8.507059e+37 }
 0x156   :  { %v969_v10 = vpop.eup %968 }
 0x157   :  { %v285_v11 = vadd.f32 1.0, %v969_v10 }
 0x159   :  { %972 = vrcp.f32 %v285_v11  ;;  %v971_v12 = vpop.eup %970  ;;  %v297_v18 = vand.u32 2147483648, %v285_v11  ;;  %v295_v20 = vand.u32 2147483647, %v285_v11  ;;  %vm291_vm10 = vweird.f32 %v285_v11 }
 0x15a   :  { %v306_v13 = vmul.f32 %v971_v12, %v304_v5  ;;  %vm311_vm13 = vweird.f32 %v971_v12 }
 0x15b   :  { %v298_v23 = vor.u32 1.1754944e-38, %v297_v18  ;;  %vm296_vm12 = vcmp.eq.f32.partialorder %v295_v20, 8.507059e+37  ;;  %vm312_vm15 = vmor %vm310_vm14, %vm311_vm13 }
 0x15c   :  { %v307_v16 = vsub.f32 1.0, %v306_v13 }
 0x15e   :  { %v308_v21 = vmul.f32 %v971_v12, %v307_v16 }
 0x15f   :  { %v973_v14 = vpop.eup %972 }
 0x160   :  { %v287_v15 = vmul.f32 %v973_v14, %v285_v11  ;;  %vm292_vm9 = vweird.f32 %v973_v14  ;;  %v309_v26 = vadd.f32 %v971_v12, %v308_v21 }
 0x161   :  { %vm293_vm11 = vmor %vm291_vm10, %vm292_vm9 }
 0x162   :  { %v288_v17 = vsub.f32 1.0, %v287_v15  ;;  %v313_v32 = vsel %vm312_vm15, %v971_v12, %v309_v26 }
 0x163   :  { %v318_v34 = vsel %vm315_vm1, %v317_v33, %v313_v32 }
 0x164   :  { %v289_v19 = vmul.f32 %v973_v14, %v288_v17  ;;  %v323_v36 = vmul.f32 0.125, %v318_v34 }
 0x166   :  { %v290_v22 = vadd.f32 %v973_v14, %v289_v19 }
 0x168   :  { %v294_v25 = vsel %vm293_vm11, %v973_v14, %v290_v22 }
 0x169   :  { %v299_v27 = vsel %vm296_vm12, %v298_v23, %v294_v25 }
 0x16a   :  { %v320_v30 = vmul.f32 %v299_v27, %v279_v24 }
 0x16c   :  { %974 = vtanh.f32 %v320_v30 }
 0x172   :  { %v975_v35 = vpop.eup %974 }
 0x173   :  { %v324_v37 = vsub.f32 %v975_v35, %v1284_v52 }
 0x175   :  { %v325_v39 = vmul.f32 %v324_v37, %v323_v36 }
 0x177   :  { %v1302_v40 = vadd.f32 %v325_v39, %v322_v38 }
 0x179   :  { %v327_v41 = vpack.c.bf16 %v1302_v40, %v1302_v40  ;;  %v410_v25 = vmul.f32 1.125, %v1302_v40 }
 0x17b   :  { %910 = vmatmul.msk.bf16.vlgmr.msrb.gmra.mxu2 %vm127_vm0, %v327_v41  ;;  %911 = vmatmul.msk.bf16.vlgmr.msrb.gmra.mxu3 %vm127_vm0, %v327_v41 }
 0x17c   :  { %912 = vmatmul.msk.bf16.vlgmr.msra.gmra.mxu0 %vm127_vm0, %v327_v41  ;;  %539 = vmatpush.bf16.msrb.mxu2 %v1229_v3 }
 0x17d   :  { %601 = vmatpush.bf16.msrb.mxu3 %v1223_v0  ;;  %614 = vmatpush.bf16.msra.mxu0 %v1225_v1 }
 0x180   :  { %540 = vmatpush.bf16.msrb.mxu2 %v1238_v6 }
 0x181   :  { %602 = vmatpush.bf16.msrb.mxu3 %v1227_v2  ;;  %615 = vmatpush.bf16.msra.mxu0 %v1233_v4 }
 0x1f9   :  { %v366_v42 = vpop.f32.mrf.mxu0 }
 0x1fa   :  { %v367_v12 = vadd.f32 %v1279_v28, %v366_v42 }
 0x1fe   :  { %v340_v43 = vpop.f32.mrf.mxu2  ;;  %v353_v44 = vpop.f32.mrf.mxu3 }
 0x1ff   :  { %v341_v45 = vadd.f32 %v1267_v8, %v340_v43  ;;  %v354_v46 = vadd.f32 %v1272_v9, %v353_v44 }
 0x201   :  { %v913_v47 = vmul.f32 -1.442695, %v341_v45  ;;  %v914_v48 = vmul.f32 -1.442695, %v354_v46  ;;  %v368_v49 = vpop.f32.mrf.mxu0 }
 0x203   :  { %976 = vpow2.f32 %v913_v47 }
 0x204   :  { %978 = vpow2.f32 %v914_v48 }
 0x206   :  { %v342_v50 = vpop.f32.mrf.mxu2  ;;  %v355_v51 = vpop.f32.mrf.mxu3 }
 0x209   :  { %v977_v52 = vpop.eup %976 }
 0x20a   :  { %v979_v53 = vpop.eup %978  ;;  %v373_v54 = vadd.f32 1.0, %v977_v52 }
 0x20b   :  { %v392_v55 = vadd.f32 1.0, %v979_v53 }
 0x20c   :  { %980 = vrcp.f32 %v373_v54  ;;  %v385_v61 = vand.u32 2147483648, %v373_v54  ;;  %v383_v5 = vand.u32 2147483647, %v373_v54  ;;  %vm379_vm3 = vweird.f32 %v373_v54 }
 0x20d   :  { %982 = vrcp.f32 %v392_v55  ;;  %v404_v17 = vand.u32 2147483648, %v392_v55  ;;  %vm398_vm7 = vweird.f32 %v392_v55  ;;  %v402_v18 = vand.u32 2147483647, %v392_v55 }
 0x20e   :  { %v386_v11 = vor.u32 1.1754944e-38, %v385_v61  ;;  %vm384_vm5 = vcmp.eq.f32.partialorder %v383_v5, 8.507059e+37 }
 0x20f   :  { %v405_v20 = vor.u32 1.1754944e-38, %v404_v17  ;;  %vm403_vm9 = vcmp.eq.f32.partialorder %v402_v18, 8.507059e+37 }
 0x212   :  { %v981_v56 = vpop.eup %980 }
 0x213   :  { %v983_v57 = vpop.eup %982  ;;  %v375_v58 = vmul.f32 %v981_v56, %v373_v54  ;;  %vm380_vm2 = vweird.f32 %v981_v56 }
 0x214   :  { %v394_v59 = vmul.f32 %v983_v57, %v392_v55  ;;  %vm381_vm4 = vmor %vm379_vm3, %vm380_vm2  ;;  %vm399_vm6 = vweird.f32 %v983_v57 }
 0x215   :  { %v376_v60 = vsub.f32 1.0, %v375_v58  ;;  %vm400_vm8 = vmor %vm398_vm7, %vm399_vm6 }
 0x216   :  { %v395_v62 = vsub.f32 1.0, %v394_v59 }
 0x217   :  { %v377_v63 = vmul.f32 %v981_v56, %v376_v60 }
 0x218   :  { %v396_v7 = vmul.f32 %v983_v57, %v395_v62 }
 0x219   :  { %v378_v10 = vadd.f32 %v981_v56, %v377_v63 }
 0x21a   :  { %v397_v15 = vadd.f32 %v983_v57, %v396_v7 }
 0x21b   :  { %v382_v13 = vsel %vm381_vm4, %v981_v56, %v378_v10 }
 0x21c   :  { %v387_v14 = vsel %vm384_vm5, %v386_v11, %v382_v13  ;;  %v401_v19 = vsel %vm400_vm8, %v983_v57, %v397_v15 }
 0x21d   :  { %v408_v16 = vmul.f32 %v387_v14, %v367_v12  ;;  %v406_v21 = vsel %vm403_vm9, %v405_v20, %v401_v19 }
 0x21e   :  { %v411_v23 = vmul.f32 0.125, %v406_v21 }
 0x21f   :  { %984 = vtanh.f32 %v408_v16 }
 0x225   :  { %v985_v22 = vpop.eup %984 }
 0x226   :  { %v412_v24 = vsub.f32 %v985_v22, %v1302_v40 }
 0x228   :  { %v413_v26 = vmul.f32 %v412_v24, %v411_v23 }
 0x22a   :  { %v1320_v27 = vadd.f32 %v413_v26, %v410_v25 }
 0x22c   :  { %v415_v29 = vpack.c.bf16 %v1320_v27, %v1320_v27  ;;  %v498_v13 = vmul.f32 1.125, %v1320_v27 }
 0x22e   :  { %915 = vmatmul.msk.bf16.vlgmr.msra.gmra.mxu1 %vm127_vm0, %v415_v29  ;;  %916 = vmatmul.msk.bf16.vlgmr.msra.gmra.mxu2 %vm127_vm0, %v415_v29 }
 0x22f   :  { %917 = vmatmul.msk.bf16.vlgmr.msra.gmra.mxu3 %vm127_vm0, %v415_v29  ;;  %627 = vmatpush.bf16.msra.mxu1 %v1229_v3 }
 0x230   :  { %689 = vmatpush.bf16.msra.mxu2 %v1223_v0  ;;  %702 = vmatpush.bf16.msra.mxu3 %v1225_v1 }
 0x233   :  { %628 = vmatpush.bf16.msra.mxu1 %v1238_v6 }
 0x234   :  { %690 = vmatpush.bf16.msra.mxu2 %v1227_v2  ;;  %703 = vmatpush.bf16.msra.mxu3 %v1233_v4 }
 0x2ab   :  { %v428_v30 = vpop.f32.mrf.mxu1 }
 0x2ac   :  { %v429_v31 = vadd.f32 %v1267_v8, %v428_v30 }
 0x2ae   :  { %v918_v32 = vmul.f32 -1.442695, %v429_v31 }
 0x2b0   :  { %986 = vpow2.f32 %v918_v32 }
 0x2b1   :  { %v441_v33 = vpop.f32.mrf.mxu2 }
 0x2b2   :  { %v442_v34 = vadd.f32 %v1272_v9, %v441_v33  ;;  %v454_v35 = vpop.f32.mrf.mxu3 }
 0x2b3   :  { %v430_v36 = vpop.f32.mrf.mxu1  ;;  %v455_v55 = vadd.f32 %v1279_v28, %v454_v35 }
 0x2b4   :  { %v919_v37 = vmul.f32 -1.442695, %v442_v34 }
 0x2b6   :  { %v987_v38 = vpop.eup %986  ;;  %988 = vpow2.f32 %v919_v37 }
 0x2b7   :  { %v461_v39 = vadd.f32 1.0, %v987_v38 }
 0x2b9   :  { %990 = vrcp.f32 %v461_v39  ;;  %v443_v40 = vpop.f32.mrf.mxu2  ;;  %v473_v47 = vand.u32 2147483648, %v461_v39  ;;  %v471_v49 = vand.u32 2147483647, %v461_v39  ;;  %vm467_vm11 = vweird.f32 %v461_v39 }
 0x2ba   :  { %v456_v41 = vpop.f32.mrf.mxu3 }
 0x2bb   :  { %v474_v53 = vor.u32 1.1754944e-38, %v473_v47  ;;  %vm472_vm13 = vcmp.eq.f32.partialorder %v471_v49, 8.507059e+37 }
 0x2bc   :  { %v989_v42 = vpop.eup %988 }
 0x2bd   :  { %v480_v43 = vadd.f32 1.0, %v989_v42 }
 0x2bf   :  { %v991_v44 = vpop.eup %990  ;;  %992 = vrcp.f32 %v480_v43  ;;  %v492_v59 = vand.u32 2147483648, %v480_v43  ;;  %v490_v61 = vand.u32 2147483647, %v480_v43  ;;  %vm486_vm15 = vweird.f32 %v480_v43 }
 0x2c0   :  { %v463_v45 = vmul.f32 %v991_v44, %v461_v39  ;;  %vm468_vm10 = vweird.f32 %v991_v44 }
 0x2c1   :  { %vm469_vm12 = vmor %vm467_vm11, %vm468_vm10  ;;  %v493_v63 = vor.u32 1.1754944e-38, %v492_v59  ;;  %vm491_vm2 = vcmp.eq.f32.partialorder %v490_v61, 8.507059e+37 }
 0x2c2   :  { %v464_v46 = vsub.f32 1.0, %v463_v45 }
 0x2c4   :  { %v465_v48 = vmul.f32 %v991_v44, %v464_v46 }
 0x2c5   :  { %v993_v50 = vpop.eup %992 }
 0x2c6   :  { %v482_v51 = vmul.f32 %v993_v50, %v480_v43  ;;  %v466_v52 = vadd.f32 %v991_v44, %v465_v48  ;;  %vm487_vm14 = vweird.f32 %v993_v50 }
 0x2c7   :  { %vm488_vm1 = vmor %vm486_vm15, %vm487_vm14 }
 0x2c8   :  { %v483_v54 = vsub.f32 1.0, %v482_v51  ;;  %v470_v56 = vsel %vm469_vm12, %v991_v44, %v466_v52 }
 0x2c9   :  { %v475_v57 = vsel %vm472_vm13, %v474_v53, %v470_v56 }
 0x2ca   :  { %v484_v58 = vmul.f32 %v993_v50, %v483_v54  ;;  %v496_v60 = vmul.f32 %v475_v57, %v455_v55 }
 0x2cc   :  { %v485_v62 = vadd.f32 %v993_v50, %v484_v58  ;;  %994 = vtanh.f32 %v496_v60 }
 0x2ce   :  { %v489_v5 = vsel %vm488_vm1, %v993_v50, %v485_v62 }
 0x2cf   :  { %v494_v7 = vsel %vm491_vm2, %v493_v63, %v489_v5 }
 0x2d0   :  { %v499_v11 = vmul.f32 0.125, %v494_v7 }
 0x2d2   :  { %v995_v10 = vpop.eup %994 }
 0x2d3   :  { %v500_v12 = vsub.f32 %v995_v10, %v1320_v27 }
 0x2d5   :  { %v501_v14 = vmul.f32 %v500_v12, %v499_v11 }
 0x2d7   :  { %v1338_v15 = vadd.f32 %v501_v14, %v498_v13 }
 0x2d9   :  { %v503_v16 = vpack.c.bf16 %v1338_v15, %v1338_v15  ;;  %v586_v53 = vmul.f32 1.125, %v1338_v15 }
 0x2db   :  { %920 = vmatmul.msk.bf16.vlgmr.msrb.gmra.mxu0 %vm127_vm0, %v503_v16  ;;  %921 = vmatmul.msk.bf16.vlgmr.msrb.gmra.mxu1 %vm127_vm0, %v503_v16 }
 0x2dc   :  { %922 = vmatmul.msk.bf16.vlgmr.msrb.gmra.mxu2 %vm127_vm0, %v503_v16  ;;  %715 = vmatpush.bf16.msrb.mxu0 %v1229_v3 }
 0x2dd   :  { %777 = vmatpush.bf16.msrb.mxu1 %v1223_v0  ;;  %790 = vmatpush.bf16.msrb.mxu2 %v1225_v1 }
 0x2e0   :  { %716 = vmatpush.bf16.msrb.mxu0 %v1238_v6 }
 0x2e1   :  { %778 = vmatpush.bf16.msrb.mxu1 %v1227_v2  ;;  %791 = vmatpush.bf16.msrb.mxu2 %v1233_v4 }
 0x358   :  { %v516_v17 = vpop.f32.mrf.mxu0  ;;  %v529_v18 = vpop.f32.mrf.mxu1 }
 0x359   :  { %v517_v19 = vadd.f32 %v1267_v8, %v516_v17  ;;  %v530_v20 = vadd.f32 %v1272_v9, %v529_v18 }
 0x35b   :  { %v923_v21 = vmul.f32 -1.442695, %v517_v19  ;;  %v924_v22 = vmul.f32 -1.442695, %v530_v20 }
 0x35d   :  { %996 = vpow2.f32 %v923_v21 }
 0x35e   :  { %998 = vpow2.f32 %v924_v22 }
 0x35f   :  { %v542_v23 = vpop.f32.mrf.mxu2 }
 0x360   :  { %v518_v0 = vpop.f32.mrf.mxu0  ;;  %v531_v24 = vpop.f32.mrf.mxu1  ;;  %v543_v40 = vadd.f32 %v1279_v28, %v542_v23 }
 0x363   :  { %v997_v1 = vpop.eup %996 }
 0x364   :  { %v999_v25 = vpop.eup %998  ;;  %v549_v26 = vadd.f32 1.0, %v997_v1 }
 0x365   :  { %v568_v27 = vadd.f32 1.0, %v999_v25 }
 0x366   :  { %1000 = vrcp.f32 %v549_v26  ;;  %v561_v34 = vand.u32 2147483648, %v549_v26  ;;  %v559_v36 = vand.u32 2147483647, %v549_v26  ;;  %vm555_vm4 = vweird.f32 %v549_v26 }
 0x367   :  { %1002 = vrcp.f32 %v568_v27  ;;  %v544_v2 = vpop.f32.mrf.mxu2  ;;  %v580_v44 = vand.u32 2147483648, %v568_v27  ;;  %vm574_vm8 = vweird.f32 %v568_v27  ;;  %v578_v46 = vand.u32 2147483647, %v568_v27 }
 0x368   :  { %v562_v39 = vor.u32 1.1754944e-38, %v561_v34  ;;  %vm560_vm6 = vcmp.eq.f32.partialorder %v559_v36, 8.507059e+37 }
 0x369   :  { %v581_v48 = vor.u32 1.1754944e-38, %v580_v44  ;;  %vm579_vm10 = vcmp.eq.f32.partialorder %v578_v46, 8.507059e+37 }
 0x36c   :  { %v1001_v4 = vpop.eup %1000 }
 0x36d   :  { %v1003_v29 = vpop.eup %1002  ;;  %v551_v30 = vmul.f32 %v1001_v4, %v549_v26  ;;  %vm556_vm3 = vweird.f32 %v1001_v4 }
 0x36e   :  { %v570_v31 = vmul.f32 %v1003_v29, %v568_v27  ;;  %vm557_vm5 = vmor %vm555_vm4, %vm556_vm3  ;;  %vm575_vm7 = vweird.f32 %v1003_v29 }
 0x36f   :  { %v552_v32 = vsub.f32 1.0, %v551_v30  ;;  %vm576_vm9 = vmor %vm574_vm8, %vm575_vm7 }
 0x370   :  { %v571_v33 = vsub.f32 1.0, %v570_v31 }
 0x371   :  { %v553_v35 = vmul.f32 %v1001_v4, %v552_v32 }
 0x372   :  { %v572_v37 = vmul.f32 %v1003_v29, %v571_v33 }
 0x373   :  { %v554_v38 = vadd.f32 %v1001_v4, %v553_v35 }
 0x374   :  { %v573_v42 = vadd.f32 %v1003_v29, %v572_v37 }
 0x375   :  { %v558_v41 = vsel %vm557_vm5, %v1001_v4, %v554_v38 }
 0x376   :  { %v563_v43 = vsel %vm560_vm6, %v562_v39, %v558_v41  ;;  %v577_v47 = vsel %vm576_vm9, %v1003_v29, %v573_v42 }
 0x377   :  { %v584_v45 = vmul.f32 %v563_v43, %v543_v40  ;;  %v582_v49 = vsel %vm579_vm10, %v581_v48, %v577_v47 }
 0x378   :  { %v587_v51 = vmul.f32 0.125, %v582_v49 }
 0x379   :  { %1004 = vtanh.f32 %v584_v45 }
 0x37f   :  { %v1005_v50 = vpop.eup %1004 }
 0x380   :  { %v588_v52 = vsub.f32 %v1005_v50, %v1338_v15 }
 0x382   :  { %v589_v54 = vmul.f32 %v588_v52, %v587_v51 }
 0x384   :  { %v590_v55 = vadd.f32 %v589_v54, %v586_v53 }
 0x386   :  { %v591_v56 = vpack.c.bf16 %v590_v55, %v590_v55  ;;  %v674_v35 = vmul.f32 1.125, %v590_v55 }
 0x388   :  { %925 = vmatmul.msk.bf16.vlgmr.msrb.gmra.mxu3 %vm127_vm0, %v591_v56  ;;  %926 = vmatmul.msk.bf16.vlgmr.msra.gmra.mxu0 %vm127_vm0, %v591_v56 }
 0x389   :  { %927 = vmatmul.msk.bf16.vlgmr.msra.gmra.mxu1 %vm127_vm0, %v591_v56  ;;  %803 = vmatpush.bf16.msrb.mxu3 %v1229_v3 }
 0x38d   :  { %804 = vmatpush.bf16.msrb.mxu3 %v1238_v6 }
 0x405   :  { %v617_v57 = vpop.f32.mrf.mxu0 }
 0x406   :  { %v618_v58 = vadd.f32 %v1272_v9, %v617_v57  ;;  %v630_v59 = vpop.f32.mrf.mxu1 }
 0x407   :  { %v631_v24 = vadd.f32 %v1279_v28, %v630_v59 }
 0x408   :  { %v929_v60 = vmul.f32 -1.442695, %v618_v58 }
 0x40a   :  { %1006 = vpow2.f32 %v929_v60 }
 0x40b   :  { %v604_v61 = vpop.f32.mrf.mxu3 }
 0x40c   :  { %v605_v62 = vadd.f32 %v1267_v8, %v604_v61 }
 0x40d   :  { %v619_v63 = vpop.f32.mrf.mxu0 }
 0x40e   :  { %v928_v5 = vmul.f32 -1.442695, %v605_v62  ;;  %v632_v7 = vpop.f32.mrf.mxu1 }
 0x410   :  { %v1007_v10 = vpop.eup %1006  ;;  %1008 = vpow2.f32 %v928_v5 }
 0x411   :  { %v656_v11 = vadd.f32 1.0, %v1007_v10 }
 0x413   :  { %v606_v12 = vpop.f32.mrf.mxu3  ;;  %1010 = vrcp.f32 %v656_v11  ;;  %v668_v27 = vand.u32 2147483648, %v656_v11  ;;  %vm662_vm1 = vweird.f32 %v656_v11  ;;  %v666_v4 = vand.u32 2147483647, %v656_v11 }
 0x415   :  { %v669_v30 = vor.u32 1.1754944e-38, %v668_v27  ;;  %vm667_vm3 = vcmp.eq.f32.partialorder %v666_v4, 8.507059e+37 }
 0x416   :  { %v1009_v3 = vpop.eup %1008 }
 0x417   :  { %v637_v13 = vadd.f32 1.0, %v1009_v3 }
 0x419   :  { %1012 = vrcp.f32 %v637_v13  ;;  %v1011_v6 = vpop.eup %1010  ;;  %v649_v19 = vand.u32 2147483648, %v637_v13  ;;  %v647_v21 = vand.u32 2147483647, %v637_v13  ;;  %vm643_vm12 = vweird.f32 %v637_v13 }
 0x41a   :  { %v658_v14 = vmul.f32 %v1011_v6, %v656_v11  ;;  %vm663_vm15 = vweird.f32 %v1011_v6 }
 0x41b   :  { %v650_v0 = vor.u32 1.1754944e-38, %v649_v19  ;;  %vm648_vm14 = vcmp.eq.f32.partialorder %v647_v21, 8.507059e+37  ;;  %vm664_vm2 = vmor %vm662_vm1, %vm663_vm15 }
 0x41c   :  { %v659_v17 = vsub.f32 1.0, %v658_v14 }
 0x41e   :  { %v660_v22 = vmul.f32 %v1011_v6, %v659_v17 }
 0x41f   :  { %v1013_v15 = vpop.eup %1012 }
 0x420   :  { %v639_v16 = vmul.f32 %v1013_v15, %v637_v13  ;;  %vm644_vm11 = vweird.f32 %v1013_v15  ;;  %v661_v25 = vadd.f32 %v1011_v6, %v660_v22 }
 0x421   :  { %vm645_vm13 = vmor %vm643_vm12, %vm644_vm11 }
 0x422   :  { %v640_v18 = vsub.f32 1.0, %v639_v16  ;;  %v665_v29 = vsel %vm664_vm2, %v1011_v6, %v661_v25 }
 0x423   :  { %v670_v31 = vsel %vm667_vm3, %v669_v30, %v665_v29 }
 0x424   :  { %v641_v20 = vmul.f32 %v1013_v15, %v640_v18  ;;  %v675_v33 = vmul.f32 0.125, %v670_v31 }
 0x426   :  { %v642_v23 = vadd.f32 %v1013_v15, %v641_v20 }
 0x428   :  { %v646_v1 = vsel %vm645_vm13, %v1013_v15, %v642_v23 }
 0x429   :  { %v651_v26 = vsel %vm648_vm14, %v650_v0, %v646_v1 }
 0x42a   :  { %v672_v2 = vmul.f32 %v651_v26, %v631_v24 }
 0x42c   :  { %1014 = vtanh.f32 %v672_v2 }
 0x432   :  { %v1015_v32 = vpop.eup %1014 }
 0x433   :  { %v676_v34 = vsub.f32 %v1015_v32, %v590_v55 }
 0x435   :  { %v677_v36 = vmul.f32 %v676_v34, %v675_v33 }
 0x437   :  { %v678_v37 = vadd.f32 %v677_v36, %v674_v35 }
 0x439   :  { %v679_v38 = vpack.c.bf16 %v678_v37, %v678_v37  ;;  %v762_v20 = vmul.f32 1.125, %v678_v37 }
 0x43b   :  { %930 = vmatmul.msk.bf16.vlgmr.msra.gmra.mxu2 %vm127_vm0, %v679_v38  ;;  %931 = vmatmul.msk.bf16.vlgmr.msra.gmra.mxu3 %vm127_vm0, %v679_v38 }
 0x43c   :  { %932 = vmatmul.msk.bf16.vlgmr.msrb.gmra.mxu0 %vm127_vm0, %v679_v38 }
 0x4b9   :  { %v718_v39 = vpop.f32.mrf.mxu0 }
 0x4ba   :  { %v719_v7 = vadd.f32 %v1279_v28, %v718_v39 }
 0x4be   :  { %v692_v40 = vpop.f32.mrf.mxu2  ;;  %v705_v41 = vpop.f32.mrf.mxu3 }
 0x4bf   :  { %v693_v42 = vadd.f32 %v1267_v8, %v692_v40  ;;  %v706_v43 = vadd.f32 %v1272_v9, %v705_v41 }
 0x4c1   :  { %v933_v44 = vmul.f32 -1.442695, %v693_v42  ;;  %v934_v45 = vmul.f32 -1.442695, %v706_v43  ;;  %v720_v46 = vpop.f32.mrf.mxu0 }
 0x4c3   :  { %1016 = vpow2.f32 %v933_v44 }
 0x4c4   :  { %1018 = vpow2.f32 %v934_v45 }
 0x4c6   :  { %v694_v47 = vpop.f32.mrf.mxu2  ;;  %v707_v48 = vpop.f32.mrf.mxu3 }
 0x4c9   :  { %v1017_v49 = vpop.eup %1016 }
 0x4ca   :  { %v1019_v50 = vpop.eup %1018  ;;  %v725_v51 = vadd.f32 1.0, %v1017_v49 }
 0x4cb   :  { %v744_v52 = vadd.f32 1.0, %v1019_v50 }
 0x4cc   :  { %1020 = vrcp.f32 %v725_v51  ;;  %v737_v58 = vand.u32 2147483648, %v725_v51  ;;  %v735_v61 = vand.u32 2147483647, %v725_v51  ;;  %vm731_vm5 = vweird.f32 %v725_v51 }
 0x4cd   :  { %1022 = vrcp.f32 %v744_v52  ;;  %v756_v13 = vand.u32 2147483648, %v744_v52  ;;  %vm750_vm9 = vweird.f32 %v744_v52  ;;  %v754_v6 = vand.u32 2147483647, %v744_v52 }
 0x4ce   :  { %v738_v5 = vor.u32 1.1754944e-38, %v737_v58  ;;  %vm736_vm7 = vcmp.eq.f32.partialorder %v735_v61, 8.507059e+37 }
 0x4cf   :  { %v757_v15 = vor.u32 1.1754944e-38, %v756_v13  ;;  %vm755_vm11 = vcmp.eq.f32.partialorder %v754_v6, 8.507059e+37 }
 0x4d2   :  { %v1021_v53 = vpop.eup %1020 }
 0x4d3   :  { %v1023_v54 = vpop.eup %1022  ;;  %v727_v55 = vmul.f32 %v1021_v53, %v725_v51  ;;  %vm732_vm4 = vweird.f32 %v1021_v53 }
 0x4d4   :  { %v746_v56 = vmul.f32 %v1023_v54, %v744_v52  ;;  %vm733_vm6 = vmor %vm731_vm5, %vm732_vm4  ;;  %vm751_vm8 = vweird.f32 %v1023_v54  ;;  %vm855_vm4 = vcmask 257024  }
 0x4d5   :  { %v728_v57 = vsub.f32 1.0, %v727_v55  ;;  %vm752_vm10 = vmor %vm750_vm9, %vm751_vm8 }
 0x4d6   :  { %v747_v59 = vsub.f32 1.0, %v746_v56 }
 0x4d7   :  { %v729_v60 = vmul.f32 %v1021_v53, %v728_v57 }
 0x4d8   :  { %v748_v62 = vmul.f32 %v1023_v54, %v747_v59 }
 0x4d9   :  { %v730_v63 = vadd.f32 %v1021_v53, %v729_v60 }
 0x4da   :  { %v749_v12 = vadd.f32 %v1023_v54, %v748_v62 }
 0x4db   :  { %v734_v10 = vsel %vm733_vm6, %v1021_v53, %v730_v63 }
 0x4dc   :  { %v739_v11 = vsel %vm736_vm7, %v738_v5, %v734_v10  ;;  %v753_v14 = vsel %vm752_vm10, %v1023_v54, %v749_v12 }
 0x4dd   :  { %v760_v3 = vmul.f32 %v739_v11, %v719_v7  ;;  %v758_v16 = vsel %vm755_vm11, %v757_v15, %v753_v14 }
 0x4de   :  { %v763_v18 = vmul.f32 0.125, %v758_v16 }
 0x4df   :  { %1024 = vtanh.f32 %v760_v3 }
 0x4e5   :  { %v1025_v17 = vpop.eup %1024 }
 0x4e6   :  { %v764_v19 = vsub.f32 %v1025_v17, %v678_v37 }
 0x4e8   :  { %v765_v21 = vmul.f32 %v764_v19, %v763_v18 }
 0x4ea   :  { %v766_v22 = vadd.f32 %v765_v21, %v762_v20 }
 0x4ec   :  { %v767_v23 = vpack.c.bf16 %v766_v22, %v766_v22 }
 0x4ee   :  { %935 = vmatmul.msk.bf16.vlgmr.msrb.gmra.mxu1 %vm127_vm0, %v767_v23  ;;  %936 = vmatmul.msk.bf16.vlgmr.msrb.gmra.mxu2 %vm127_vm0, %v767_v23 }
 0x4ef   :  { %937 = vmatmul.msk.bf16.vlgmr.msrb.gmra.mxu3 %vm127_vm0, %v767_v23 }
 0x56b   :  { %v780_v0 = vpop.f32.mrf.mxu1 }
 0x56c   :  { %v781_v24 = vadd.f32 %v1267_v8, %v780_v0 }
 0x56e   :  { %v938_v1 = vmul.f32 -1.442695, %v781_v24 }
 0x570   :  { %1026 = vpow2.f32 %v938_v1 }
 0x571   :  { %v793_v25 = vpop.f32.mrf.mxu2 }
 0x572   :  { %v794_v26 = vadd.f32 %v1272_v9, %v793_v25  ;;  %v806_v27 = vpop.f32.mrf.mxu3 }
 0x573   :  { %v782_v2 = vpop.f32.mrf.mxu1  ;;  %v807_v44 = vadd.f32 %v1279_v28, %v806_v27  ;;  %v850_v28 = vmul.f32 1.125, %v766_v22 }
 0x574   :  { %v939_v4 = vmul.f32 -1.442695, %v794_v26 }
 0x576   :  { %v1027_v29 = vpop.eup %1026  ;;  %1028 = vpow2.f32 %v939_v4 }
 0x577   :  { %v813_v30 = vadd.f32 1.0, %v1027_v29 }
 0x579   :  { %1030 = vrcp.f32 %v813_v30  ;;  %v795_v31 = vpop.f32.mrf.mxu2  ;;  %v825_v37 = vand.u32 2147483648, %v813_v30  ;;  %v823_v39 = vand.u32 2147483647, %v813_v30  ;;  %vm819_vm12 = vweird.f32 %v813_v30 }
 0x57a   :  { %v808_v32 = vpop.f32.mrf.mxu3 }
 0x57b   :  { %v826_v42 = vor.u32 1.1754944e-38, %v825_v37  ;;  %vm824_vm14 = vcmp.eq.f32.partialorder %v823_v39, 8.507059e+37 }
 0x57c   :  { %v1029_v33 = vpop.eup %1028 }
 0x57d   :  { %v832_v34 = vadd.f32 1.0, %v1029_v33 }
 0x57f   :  { %v1031_v35 = vpop.eup %1030  ;;  %1032 = vrcp.f32 %v832_v34  ;;  %v844_v48 = vand.u32 2147483648, %v832_v34  ;;  %v842_v50 = vand.u32 2147483647, %v832_v34  ;;  %vm838_vm1 = vweird.f32 %v832_v34 }
 0x580   :  { %v815_v36 = vmul.f32 %v1031_v35, %v813_v30  ;;  %vm820_vm0 = vweird.f32 %v1031_v35 }
 0x581   :  { %vm821_vm13 = vmor %vm819_vm12, %vm820_vm0  ;;  %v845_v52 = vor.u32 1.1754944e-38, %v844_v48  ;;  %vm843_vm3 = vcmp.eq.f32.partialorder %v842_v50, 8.507059e+37 }
 0x582   :  { %v816_v8 = vsub.f32 1.0, %v815_v36 }
 0x584   :  { %v817_v38 = vmul.f32 %v1031_v35, %v816_v8 }
 0x585   :  { %v1033_v9 = vpop.eup %1032 }
 0x586   :  { %v834_v40 = vmul.f32 %v1033_v9, %v832_v34  ;;  %v818_v41 = vadd.f32 %v1031_v35, %v817_v38  ;;  %vm839_vm15 = vweird.f32 %v1033_v9 }
 0x587   :  { %vm840_vm2 = vmor %vm838_vm1, %vm839_vm15 }
 0x588   :  { %v835_v43 = vsub.f32 1.0, %v834_v40  ;;  %v822_v45 = vsel %vm821_vm13, %v1031_v35, %v818_v41 }
 0x589   :  { %v827_v46 = vsel %vm824_vm14, %v826_v42, %v822_v45 }
 0x58a   :  { %v836_v47 = vmul.f32 %v1033_v9, %v835_v43  ;;  %v848_v49 = vmul.f32 %v827_v46, %v807_v44 }
 0x58c   :  { %1034 = vtanh.f32 %v848_v49  ;;  %v837_v51 = vadd.f32 %v1033_v9, %v836_v47 }
 0x58e   :  { %v841_v53 = vsel %vm840_vm2, %v1033_v9, %v837_v51 }
 0x58f   :  { %v846_v54 = vsel %vm843_vm3, %v845_v52, %v841_v53 }
 0x590   :  { %v851_v57 = vmul.f32 0.125, %v846_v54 }
 0x592   :  { %v1035_v55 = vpop.eup %1034 }
 0x593   :  { %v852_v56 = vsub.f32 %v1035_v55, %v766_v22 }
 0x595   :  { %v853_v58 = vmul.f32 %v852_v56, %v851_v57 }
 0x597   :  { %v854_v59 = vadd.f32 %v853_v58, %v850_v28 }
 0x599   :  { %856 = vst.msk [vmem:[#allocation10] sm:$0xf] %vm855_vm4, %v854_v59 }
 0x59a   :  { %867 = dma.vmem_to_hbm [thread:$0]  %s863_s23, 64, %s865_s26, [#allocation4]  }
 0x59b   :  { %1162 = dma.done.wait [#allocation4], 64  }
 0x59c   :  { %1163 = vsyncadd [#allocation4], 4294967232 }
 0x59d   :  { %872 = vsyncpa [#allocation3], 1 }
 0x59e   :  { %873 = vsyncpa [#allocation6], 1 }
 0x59f   :  { %874 = vsyncpa [#allocation9], 1 }
 0x5a0   :  { %875 = vsyncpa [#allocation4], 1 }

</bundles_post_ra>
